<compile_context>
chip_gen: v6e
topology: v6e:2x2x1
jax: 0.10.0
libtpu: 0.0.40
codegen_flags: <defaults>
</compile_context>

<pallas_src>
import jax
import jax.numpy as jnp
import numpy as np
from jax.experimental import pallas as pl
from jax.experimental.pallas import tpu as pltpu


def lstm_kernel(x_ref, wih_ref, whh_ref, b_ref, wfc_ref, bfc_ref, out_ref, xp_ref):
    # x_ref:   (T*B, E)  bf16, time-major embedded input, flattened over (T, B)
    # wih_ref: (E, 4H)   bf16, W_ih^T
    # whh_ref: (H, 4H)   bf16, W_hh^T
    # b_ref:   (1, 4H)   f32, b_ih + b_hh (combined once)
    # wfc_ref: (H, OP)   bf16, W_fc^T zero-padded to lane-dense OP
    # bfc_ref: (1, OP)   f32
    # out_ref: (B, OP)   f32
    # xp_ref:  (T*B, 4H) f32 VMEM scratch: hoisted input projection (+bias)
    B = out_ref.shape[0]
    T = x_ref.shape[0] // B
    H = whh_ref.shape[0]

    # Prologue: all timesteps' input projection as ONE batched bf16 MXU matmul
    # with f32 accumulation, bias folded in here (not re-broadcast per step).
    xp_ref[...] = (
        jnp.dot(x_ref[...], wih_ref[...], preferred_element_type=jnp.float32)
        + b_ref[...])

    whh = whh_ref[...]                                  # resident bf16 (H, 4H)

    # PyTorch gate order i, f, g, o: lanes [2H, 3H) (cell/g gate) use tanh,
    # all other lanes use sigmoid.  Mask hoisted out of the loop.
    lane = jax.lax.broadcasted_iota(jnp.int32, (B, 4 * H), 1)
    is_g = (lane >= 2 * H) & (lane < 3 * H)

    def activate(gates):
        # One EUP tanh pass over the full (B, 4H) vreg:
        #   g lanes      -> tanh(x)
        #   other lanes  -> sigmoid(x) = 0.5 * tanh(0.5 * x) + 0.5
        pre = jnp.where(is_g, gates, 0.5 * gates)
        t = jnp.tanh(pre)
        return jnp.where(is_g, t, 0.5 * t + 0.5)

    # ---- peel step 0: h0 = c0 = 0 -> no recurrent matmul, no f*c term.
    act0 = activate(xp_ref[pl.ds(0, B), :])
    i0 = act0[:, 0 * H:1 * H]
    g0 = act0[:, 2 * H:3 * H]
    o0 = act0[:, 3 * H:4 * H]
    c_init = i0 * g0
    h_init = o0 * jnp.tanh(c_init)

    def step(t, carry):
        h, c = carry
        start = pl.multiple_of(t * B, B)                # sublane-aligned slice
        gates = xp_ref[pl.ds(start, B), :] + jnp.dot(
            h.astype(whh.dtype), whh, preferred_element_type=jnp.float32)
        act = activate(gates)
        i_g = act[:, 0 * H:1 * H]
        f_g = act[:, 1 * H:2 * H]
        g_g = act[:, 2 * H:3 * H]
        o_g = act[:, 3 * H:4 * H]
        c_new = f_g * c + i_g * g_g                     # f32 elementwise
        h_new = o_g * jnp.tanh(c_new)
        return h_new, c_new

    unroll = max(1, min(T - 1, 8))                      # bounded unroll
    h_last, _ = jax.lax.fori_loop(1, T, step, (h_init, c_init), unroll=unroll)

    # Fused final FC + sigmoid, lane-dense padded output (unmasked store).
    logits = jnp.dot(h_last.astype(wfc_ref.dtype), wfc_ref[...],
                     preferred_element_type=jnp.float32) + bfc_ref[...]
    out_ref[...] = jax.nn.sigmoid(logits).astype(out_ref.dtype)


def prepare_params(emb_table, w_ih, w_hh, b_ih, b_hh, w_fc, b_fc):
    """One-time prep: transposes, bias combine, bf16 MXU operands, FC padding."""
    H = w_hh.shape[1]
    O = w_fc.shape[0]
    OP = max(128, ((O + 127) // 128) * 128)   # lane-dense padded output width
    wih_t = jnp.asarray(w_ih.T, jnp.bfloat16)                 # (E, 4H)
    whh_t = jnp.asarray(w_hh.T, jnp.bfloat16)                 # (H, 4H)
    bias = (b_ih + b_hh).reshape(1, 4 * H).astype(jnp.float32)
    wfc_t = jnp.zeros((H, OP), jnp.float32).at[:, :O].set(w_fc.T).astype(jnp.bfloat16)
    bfc = jnp.zeros((1, OP), jnp.float32).at[:, :O].set(b_fc.reshape(1, O))
    return dict(emb=jnp.asarray(emb_table, jnp.bfloat16), wih_t=wih_t,
                whh_t=whh_t, bias=bias, wfc_t=wfc_t, bfc=bfc, out_dim=O)


def lstm_model_forward(x_tokens, params):
    emb = params["emb"]
    B, T = x_tokens.shape
    E = emb.shape[1]
    H = params["whh_t"].shape[0]
    OP = params["wfc_t"].shape[1]
    O = params["out_dim"]

    # Embedding lookup (plain JAX glue).  Gather time-major directly by
    # transposing only the tiny int token matrix -> no float transpose pass.
    x_flat = emb[x_tokens.T].reshape(T * B, E)          # (T*B, E) bf16

    out_padded = pl.pallas_call(
        lstm_kernel,
        out_shape=jax.ShapeDtypeStruct((B, OP), jnp.float32),
        grid_spec=pltpu.PrefetchScalarGridSpec(
            num_scalar_prefetch=0,
            grid=(1,),
            in_specs=[
                pl.BlockSpec((T * B, E), lambda i: (0, 0)),     # embedded x
                pl.BlockSpec((E, 4 * H), lambda i: (0, 0)),     # W_ih^T
                pl.BlockSpec((H, 4 * H), lambda i: (0, 0)),     # W_hh^T
                pl.BlockSpec((1, 4 * H), lambda i: (0, 0)),     # combined bias
                pl.BlockSpec((H, OP), lambda i: (0, 0)),        # W_fc^T (padded)
                pl.BlockSpec((1, OP), lambda i: (0, 0)),        # b_fc (padded)
            ],
            out_specs=pl.BlockSpec((B, OP), lambda i: (0, 0)),
            scratch_shapes=[pltpu.VMEM((T * B, 4 * H), jnp.float32)],
        ),
        compiler_params=pltpu.CompilerParams(
            dimension_semantics=("arbitrary",)),
    )(x_flat, params["wih_t"], params["whh_t"], params["bias"],
      params["wfc_t"], params["bfc"])
    return out_padded[:, :O]


def reference_forward(x_tokens, emb_table, w_ih, w_hh, b_ih, b_hh, w_fc, b_fc):
    """Pure-JAX f32 reference matching PyTorch LSTM semantics (gate order i,f,g,o)."""
    B, T = x_tokens.shape
    H = w_hh.shape[1]
    emb = emb_table[x_tokens]                  # (B, T, E)
    h = jnp.zeros((B, H), jnp.float32)
    c = jnp.zeros((B, H), jnp.float32)
    for t in range(T):
        gates = emb[:, t, :] @ w_ih.T + h @ w_hh.T + b_ih + b_hh
        i = jax.nn.sigmoid(gates[:, 0 * H:1 * H])
        f = jax.nn.sigmoid(gates[:, 1 * H:2 * H])
        g = jnp.tanh(gates[:, 2 * H:3 * H])
        o = jax.nn.sigmoid(gates[:, 3 * H:4 * H])
        c = f * c + i * g
        h = o * jnp.tanh(c)
    logits = h @ w_fc.T + b_fc
    return jax.nn.sigmoid(logits)


if __name__ == "__main__":
    B, T, E, H, O, V = 8, 8, 32, 32, 4, 64   # batch, seq, embed, hidden, output, vocab

    key = jax.random.PRNGKey(0)
    keys = jax.random.split(key, 8)
    x = jax.random.randint(keys[0], (B, T), 0, V)
    emb_table = 0.1 * jax.random.normal(keys[1], (V, E), jnp.float32)
    s = 1.0 / float(np.sqrt(H))
    w_ih = jax.random.uniform(keys[2], (4 * H, E), jnp.float32, -s, s)
    w_hh = jax.random.uniform(keys[3], (4 * H, H), jnp.float32, -s, s)
    b_ih = jax.random.uniform(keys[4], (4 * H,), jnp.float32, -s, s)
    b_hh = jax.random.uniform(keys[5], (4 * H,), jnp.float32, -s, s)
    w_fc = jax.random.uniform(keys[6], (O, H), jnp.float32, -s, s)
    b_fc = jax.random.uniform(keys[7], (O,), jnp.float32, -s, s)

    params = prepare_params(emb_table, w_ih, w_hh, b_ih, b_hh, w_fc, b_fc)
    out = lstm_model_forward(x, params)
    out = jax.block_until_ready(out)

    ref = reference_forward(x, emb_table, w_ih, w_hh, b_ih, b_hh, w_fc, b_fc)
    # Tolerance relaxed vs. 1e-5: MXU operands (embedding, W_ih, W_hh, W_fc)
    # are bf16 (f32 accumulation) per the perf review.
    np.testing.assert_allclose(np.asarray(out), np.asarray(ref),
                               rtol=2e-2, atol=2e-2)
    print("KERNEL_OK")
</pallas_src>

<mosaic_0001>
module attributes {stable_mosaic.version = 11 : i64} {
  func.func @lstm_kernel(%arg0: i32, %arg1: memref<64x32xbf16, #tpu.memory_space<vmem>>, %arg2: memref<32x128xbf16, #tpu.memory_space<vmem>>, %arg3: memref<32x128xbf16, #tpu.memory_space<vmem>>, %arg4: memref<1x128xf32, #tpu.memory_space<vmem>>, %arg5: memref<32x128xbf16, #tpu.memory_space<vmem>>, %arg6: memref<1x128xf32, #tpu.memory_space<vmem>>, %arg7: memref<8x128xf32, #tpu.memory_space<vmem>>, %arg8: memref<64x128xf32, #tpu.memory_space<vmem>>) attributes {dimension_semantics = [#tpu.dimension_semantics<arbitrary>], iteration_bounds = array<i64: 1>, scalar_prefetch = 0 : i64, scratch_operands = 1 : i64, tpu.core_type = #tpu.core_type<tc>, window_params = [{pipeline_mode = #tpu.pipeline_mode<synchronous>, transform_indices = @transform_0, window_bounds = array<i64: 64, 32>}, {pipeline_mode = #tpu.pipeline_mode<synchronous>, transform_indices = @transform_1, window_bounds = array<i64: 32, 128>}, {pipeline_mode = #tpu.pipeline_mode<synchronous>, transform_indices = @transform_2, window_bounds = array<i64: 32, 128>}, {pipeline_mode = #tpu.pipeline_mode<synchronous>, transform_indices = @transform_3, window_bounds = array<i64: 1, 128>}, {pipeline_mode = #tpu.pipeline_mode<synchronous>, transform_indices = @transform_4, window_bounds = array<i64: 32, 128>}, {pipeline_mode = #tpu.pipeline_mode<synchronous>, transform_indices = @transform_5, window_bounds = array<i64: 1, 128>}, {pipeline_mode = #tpu.pipeline_mode<synchronous>, transform_indices = @transform_6, window_bounds = array<i64: 8, 128>}]} {
    %c0 = arith.constant 0 : index
    %c0_0 = arith.constant 0 : index
    %0 = vector.load %arg1[%c0, %c0_0] : memref<64x32xbf16, #tpu.memory_space<vmem>>, vector<64x32xbf16>
    %c0_1 = arith.constant 0 : index
    %c0_2 = arith.constant 0 : index
    %1 = vector.load %arg2[%c0_1, %c0_2] : memref<32x128xbf16, #tpu.memory_space<vmem>>, vector<32x128xbf16>
    %cst = arith.constant dense<0.000000e+00> : vector<64x128xf32>
    %2 = tpu.matmul %0, %1, %cst {dimension_numbers = #tpu.dot_dimension_numbers<[1], [0], [0], [1], [0, 0, 1, 1], [], []>} : vector<64x32xbf16>, vector<32x128xbf16>, vector<64x128xf32> -> vector<64x128xf32>
    %c0_3 = arith.constant 0 : index
    %c0_4 = arith.constant 0 : index
    %3 = vector.load %arg4[%c0_3, %c0_4] : memref<1x128xf32, #tpu.memory_space<vmem>>, vector<1x128xf32>
    %4 = vector.broadcast %3 : vector<1x128xf32> to vector<64x128xf32>
    %5 = arith.addf %2, %4 : vector<64x128xf32>
    %c0_5 = arith.constant 0 : index
    %c0_6 = arith.constant 0 : index
    %6 = vector.load %arg8[%c0_5, %c0_6] : memref<64x128xf32, #tpu.memory_space<vmem>>, vector<64x128xf32>
    tpu.vector_store %arg8[%c0_5, %c0_6], %5 {strides = array<i32>} : memref<64x128xf32, #tpu.memory_space<vmem>>, vector<64x128xf32>,
    %c0_7 = arith.constant 0 : index
    %c0_8 = arith.constant 0 : index
    %7 = vector.load %arg3[%c0_7, %c0_8] : memref<32x128xbf16, #tpu.memory_space<vmem>>, vector<32x128xbf16>
    %8 = tpu.iota {dimensions = array<i32: 1>} : vector<8x128xi32>
    %c64_i32 = arith.constant 64 : i32
    %9 = vector.broadcast %c64_i32 : i32 to vector<8x128xi32>
    %10 = arith.cmpi sge, %8, %9 : vector<8x128xi32>
    %c96_i32 = arith.constant 96 : i32
    %11 = vector.broadcast %c96_i32 : i32 to vector<8x128xi32>
    %12 = arith.cmpi slt, %8, %11 : vector<8x128xi32>
    %13 = arith.andi %10, %12 : vector<8x128xi1>
    %c0_9 = arith.constant 0 : index
    %c0_10 = arith.constant 0 : index
    %14 = vector.load %arg8[%c0_9, %c0_10] : memref<64x128xf32, #tpu.memory_space<vmem>>, vector<8x128xf32>
    %cst_11 = arith.constant 5.000000e-01 : f32
    %15 = vector.broadcast %cst_11 : f32 to vector<8x128xf32>
    %16 = arith.mulf %15, %14 : vector<8x128xf32>
    %17 = arith.select %13, %14, %16 : vector<8x128xi1>, vector<8x128xf32>
    %18 = math.tanh %17 : vector<8x128xf32>
    %cst_12 = arith.constant 5.000000e-01 : f32
    %19 = vector.broadcast %cst_12 : f32 to vector<8x128xf32>
    %20 = arith.mulf %19, %18 : vector<8x128xf32>
    %cst_13 = arith.constant 5.000000e-01 : f32
    %21 = vector.broadcast %cst_13 : f32 to vector<8x128xf32>
    %22 = arith.addf %20, %21 : vector<8x128xf32>
    %23 = arith.select %13, %18, %22 : vector<8x128xi1>, vector<8x128xf32>
    %24 = vector.extract_strided_slice %23 {offsets = [0, 0], sizes = [8, 32], strides = [1, 1]} : vector<8x128xf32> to vector<8x32xf32>
    %25 = vector.extract_strided_slice %23 {offsets = [0, 64], sizes = [8, 32], strides = [1, 1]} : vector<8x128xf32> to vector<8x32xf32>
    %26 = vector.extract_strided_slice %23 {offsets = [0, 96], sizes = [8, 32], strides = [1, 1]} : vector<8x128xf32> to vector<8x32xf32>
    %27 = arith.mulf %24, %25 : vector<8x32xf32>
    %28 = math.tanh %27 : vector<8x32xf32>
    %29 = arith.mulf %26, %28 : vector<8x32xf32>
    %c1_i32 = arith.constant 1 : i32
    %c8_i32 = arith.constant 8 : i32
    %30 = arith.muli %c1_i32, %c8_i32 : i32
    %31 = tpu.assume_multiple %30, 8 : i32
    %32 = arith.index_cast %31 : i32 to index
    %c0_14 = arith.constant 0 : index
    %33 = vector.load %arg8[%32, %c0_14] : memref<64x128xf32, #tpu.memory_space<vmem>>, vector<8x128xf32>
    %34 = arith.truncf %29 : vector<8x32xf32> to vector<8x32xbf16>
    %cst_15 = arith.constant dense<0.000000e+00> : vector<8x128xf32>
    %35 = tpu.matmul %34, %7, %cst_15 {dimension_numbers = #tpu.dot_dimension_numbers<[1], [0], [0], [1], [0, 0, 1, 1], [], []>} : vector<8x32xbf16>, vector<32x128xbf16>, vector<8x128xf32> -> vector<8x128xf32>
    %36 = arith.addf %33, %35 : vector<8x128xf32>
    %cst_16 = arith.constant 5.000000e-01 : f32
    %37 = vector.broadcast %cst_16 : f32 to vector<8x128xf32>
    %38 = arith.mulf %37, %36 : vector<8x128xf32>
    %39 = arith.select %13, %36, %38 : vector<8x128xi1>, vector<8x128xf32>
    %40 = math.tanh %39 : vector<8x128xf32>
    %cst_17 = arith.constant 5.000000e-01 : f32
    %41 = vector.broadcast %cst_17 : f32 to vector<8x128xf32>
    %42 = arith.mulf %41, %40 : vector<8x128xf32>
    %cst_18 = arith.constant 5.000000e-01 : f32
    %43 = vector.broadcast %cst_18 : f32 to vector<8x128xf32>
    %44 = arith.addf %42, %43 : vector<8x128xf32>
    %45 = arith.select %13, %40, %44 : vector<8x128xi1>, vector<8x128xf32>
    %46 = vector.extract_strided_slice %45 {offsets = [0, 0], sizes = [8, 32], strides = [1, 1]} : vector<8x128xf32> to vector<8x32xf32>
    %47 = vector.extract_strided_slice %45 {offsets = [0, 32], sizes = [8, 32], strides = [1, 1]} : vector<8x128xf32> to vector<8x32xf32>
    %48 = vector.extract_strided_slice %45 {offsets = [0, 64], sizes = [8, 32], strides = [1, 1]} : vector<8x128xf32> to vector<8x32xf32>
    %49 = vector.extract_strided_slice %45 {offsets = [0, 96], sizes = [8, 32], strides = [1, 1]} : vector<8x128xf32> to vector<8x32xf32>
    %50 = arith.mulf %47, %27 : vector<8x32xf32>
    %51 = arith.mulf %46, %48 : vector<8x32xf32>
    %52 = arith.addf %50, %51 : vector<8x32xf32>
    %53 = math.tanh %52 : vector<8x32xf32>
    %54 = arith.mulf %49, %53 : vector<8x32xf32>
    %c2_i32 = arith.constant 2 : i32
    %c8_i32_19 = arith.constant 8 : i32
    %55 = arith.muli %c2_i32, %c8_i32_19 : i32
    %56 = tpu.assume_multiple %55, 8 : i32
    %57 = arith.index_cast %56 : i32 to index
    %c0_20 = arith.constant 0 : index
    %58 = vector.load %arg8[%57, %c0_20] : memref<64x128xf32, #tpu.memory_space<vmem>>, vector<8x128xf32>
    %59 = arith.truncf %54 : vector<8x32xf32> to vector<8x32xbf16>
    %cst_21 = arith.constant dense<0.000000e+00> : vector<8x128xf32>
    %60 = tpu.matmul %59, %7, %cst_21 {dimension_numbers = #tpu.dot_dimension_numbers<[1], [0], [0], [1], [0, 0, 1, 1], [], []>} : vector<8x32xbf16>, vector<32x128xbf16>, vector<8x128xf32> -> vector<8x128xf32>
    %61 = arith.addf %58, %60 : vector<8x128xf32>
    %cst_22 = arith.constant 5.000000e-01 : f32
    %62 = vector.broadcast %cst_22 : f32 to vector<8x128xf32>
    %63 = arith.mulf %62, %61 : vector<8x128xf32>
    %64 = arith.select %13, %61, %63 : vector<8x128xi1>, vector<8x128xf32>
    %65 = math.tanh %64 : vector<8x128xf32>
    %cst_23 = arith.constant 5.000000e-01 : f32
    %66 = vector.broadcast %cst_23 : f32 to vector<8x128xf32>
    %67 = arith.mulf %66, %65 : vector<8x128xf32>
    %cst_24 = arith.constant 5.000000e-01 : f32
    %68 = vector.broadcast %cst_24 : f32 to vector<8x128xf32>
    %69 = arith.addf %67, %68 : vector<8x128xf32>
    %70 = arith.select %13, %65, %69 : vector<8x128xi1>, vector<8x128xf32>
    %71 = vector.extract_strided_slice %70 {offsets = [0, 0], sizes = [8, 32], strides = [1, 1]} : vector<8x128xf32> to vector<8x32xf32>
    %72 = vector.extract_strided_slice %70 {offsets = [0, 32], sizes = [8, 32], strides = [1, 1]} : vector<8x128xf32> to vector<8x32xf32>
    %73 = vector.extract_strided_slice %70 {offsets = [0, 64], sizes = [8, 32], strides = [1, 1]} : vector<8x128xf32> to vector<8x32xf32>
    %74 = vector.extract_strided_slice %70 {offsets = [0, 96], sizes = [8, 32], strides = [1, 1]} : vector<8x128xf32> to vector<8x32xf32>
    %75 = arith.mulf %72, %52 : vector<8x32xf32>
    %76 = arith.mulf %71, %73 : vector<8x32xf32>
    %77 = arith.addf %75, %76 : vector<8x32xf32>
    %78 = math.tanh %77 : vector<8x32xf32>
    %79 = arith.mulf %74, %78 : vector<8x32xf32>
    %c3_i32 = arith.constant 3 : i32
    %c8_i32_25 = arith.constant 8 : i32
    %80 = arith.muli %c3_i32, %c8_i32_25 : i32
    %81 = tpu.assume_multiple %80, 8 : i32
    %82 = arith.index_cast %81 : i32 to index
    %c0_26 = arith.constant 0 : index
    %83 = vector.load %arg8[%82, %c0_26] : memref<64x128xf32, #tpu.memory_space<vmem>>, vector<8x128xf32>
    %84 = arith.truncf %79 : vector<8x32xf32> to vector<8x32xbf16>
    %cst_27 = arith.constant dense<0.000000e+00> : vector<8x128xf32>
    %85 = tpu.matmul %84, %7, %cst_27 {dimension_numbers = #tpu.dot_dimension_numbers<[1], [0], [0], [1], [0, 0, 1, 1], [], []>} : vector<8x32xbf16>, vector<32x128xbf16>, vector<8x128xf32> -> vector<8x128xf32>
    %86 = arith.addf %83, %85 : vector<8x128xf32>
    %cst_28 = arith.constant 5.000000e-01 : f32
    %87 = vector.broadcast %cst_28 : f32 to vector<8x128xf32>
    %88 = arith.mulf %87, %86 : vector<8x128xf32>
    %89 = arith.select %13, %86, %88 : vector<8x128xi1>, vector<8x128xf32>
    %90 = math.tanh %89 : vector<8x128xf32>
    %cst_29 = arith.constant 5.000000e-01 : f32
    %91 = vector.broadcast %cst_29 : f32 to vector<8x128xf32>
    %92 = arith.mulf %91, %90 : vector<8x128xf32>
    %cst_30 = arith.constant 5.000000e-01 : f32
    %93 = vector.broadcast %cst_30 : f32 to vector<8x128xf32>
    %94 = arith.addf %92, %93 : vector<8x128xf32>
    %95 = arith.select %13, %90, %94 : vector<8x128xi1>, vector<8x128xf32>
    %96 = vector.extract_strided_slice %95 {offsets = [0, 0], sizes = [8, 32], strides = [1, 1]} : vector<8x128xf32> to vector<8x32xf32>
    %97 = vector.extract_strided_slice %95 {offsets = [0, 32], sizes = [8, 32], strides = [1, 1]} : vector<8x128xf32> to vector<8x32xf32>
    %98 = vector.extract_strided_slice %95 {offsets = [0, 64], sizes = [8, 32], strides = [1, 1]} : vector<8x128xf32> to vector<8x32xf32>
    %99 = vector.extract_strided_slice %95 {offsets = [0, 96], sizes = [8, 32], strides = [1, 1]} : vector<8x128xf32> to vector<8x32xf32>
    %100 = arith.mulf %97, %77 : vector<8x32xf32>
    %101 = arith.mulf %96, %98 : vector<8x32xf32>
    %102 = arith.addf %100, %101 : vector<8x32xf32>
    %103 = math.tanh %102 : vector<8x32xf32>
    %104 = arith.mulf %99, %103 : vector<8x32xf32>
    %c4_i32 = arith.constant 4 : i32
    %c8_i32_31 = arith.constant 8 : i32
    %105 = arith.muli %c4_i32, %c8_i32_31 : i32
    %106 = tpu.assume_multiple %105, 8 : i32
    %107 = arith.index_cast %106 : i32 to index
    %c0_32 = arith.constant 0 : index
    %108 = vector.load %arg8[%107, %c0_32] : memref<64x128xf32, #tpu.memory_space<vmem>>, vector<8x128xf32>
    %109 = arith.truncf %104 : vector<8x32xf32> to vector<8x32xbf16>
    %cst_33 = arith.constant dense<0.000000e+00> : vector<8x128xf32>
    %110 = tpu.matmul %109, %7, %cst_33 {dimension_numbers = #tpu.dot_dimension_numbers<[1], [0], [0], [1], [0, 0, 1, 1], [], []>} : vector<8x32xbf16>, vector<32x128xbf16>, vector<8x128xf32> -> vector<8x128xf32>
    %111 = arith.addf %108, %110 : vector<8x128xf32>
    %cst_34 = arith.constant 5.000000e-01 : f32
    %112 = vector.broadcast %cst_34 : f32 to vector<8x128xf32>
    %113 = arith.mulf %112, %111 : vector<8x128xf32>
    %114 = arith.select %13, %111, %113 : vector<8x128xi1>, vector<8x128xf32>
    %115 = math.tanh %114 : vector<8x128xf32>
    %cst_35 = arith.constant 5.000000e-01 : f32
    %116 = vector.broadcast %cst_35 : f32 to vector<8x128xf32>
    %117 = arith.mulf %116, %115 : vector<8x128xf32>
    %cst_36 = arith.constant 5.000000e-01 : f32
    %118 = vector.broadcast %cst_36 : f32 to vector<8x128xf32>
    %119 = arith.addf %117, %118 : vector<8x128xf32>
    %120 = arith.select %13, %115, %119 : vector<8x128xi1>, vector<8x128xf32>
    %121 = vector.extract_strided_slice %120 {offsets = [0, 0], sizes = [8, 32], strides = [1, 1]} : vector<8x128xf32> to vector<8x32xf32>
    %122 = vector.extract_strided_slice %120 {offsets = [0, 32], sizes = [8, 32], strides = [1, 1]} : vector<8x128xf32> to vector<8x32xf32>
    %123 = vector.extract_strided_slice %120 {offsets = [0, 64], sizes = [8, 32], strides = [1, 1]} : vector<8x128xf32> to vector<8x32xf32>
    %124 = vector.extract_strided_slice %120 {offsets = [0, 96], sizes = [8, 32], strides = [1, 1]} : vector<8x128xf32> to vector<8x32xf32>
    %125 = arith.mulf %122, %102 : vector<8x32xf32>
    %126 = arith.mulf %121, %123 : vector<8x32xf32>
    %127 = arith.addf %125, %126 : vector<8x32xf32>
    %128 = math.tanh %127 : vector<8x32xf32>
    %129 = arith.mulf %124, %128 : vector<8x32xf32>
    %c5_i32 = arith.constant 5 : i32
    %c8_i32_37 = arith.constant 8 : i32
    %130 = arith.muli %c5_i32, %c8_i32_37 : i32
    %131 = tpu.assume_multiple %130, 8 : i32
    %132 = arith.index_cast %131 : i32 to index
    %c0_38 = arith.constant 0 : index
    %133 = vector.load %arg8[%132, %c0_38] : memref<64x128xf32, #tpu.memory_space<vmem>>, vector<8x128xf32>
    %134 = arith.truncf %129 : vector<8x32xf32> to vector<8x32xbf16>
    %cst_39 = arith.constant dense<0.000000e+00> : vector<8x128xf32>
    %135 = tpu.matmul %134, %7, %cst_39 {dimension_numbers = #tpu.dot_dimension_numbers<[1], [0], [0], [1], [0, 0, 1, 1], [], []>} : vector<8x32xbf16>, vector<32x128xbf16>, vector<8x128xf32> -> vector<8x128xf32>
    %136 = arith.addf %133, %135 : vector<8x128xf32>
    %cst_40 = arith.constant 5.000000e-01 : f32
    %137 = vector.broadcast %cst_40 : f32 to vector<8x128xf32>
    %138 = arith.mulf %137, %136 : vector<8x128xf32>
    %139 = arith.select %13, %136, %138 : vector<8x128xi1>, vector<8x128xf32>
    %140 = math.tanh %139 : vector<8x128xf32>
    %cst_41 = arith.constant 5.000000e-01 : f32
    %141 = vector.broadcast %cst_41 : f32 to vector<8x128xf32>
    %142 = arith.mulf %141, %140 : vector<8x128xf32>
    %cst_42 = arith.constant 5.000000e-01 : f32
    %143 = vector.broadcast %cst_42 : f32 to vector<8x128xf32>
    %144 = arith.addf %142, %143 : vector<8x128xf32>
    %145 = arith.select %13, %140, %144 : vector<8x128xi1>, vector<8x128xf32>
    %146 = vector.extract_strided_slice %145 {offsets = [0, 0], sizes = [8, 32], strides = [1, 1]} : vector<8x128xf32> to vector<8x32xf32>
    %147 = vector.extract_strided_slice %145 {offsets = [0, 32], sizes = [8, 32], strides = [1, 1]} : vector<8x128xf32> to vector<8x32xf32>
    %148 = vector.extract_strided_slice %145 {offsets = [0, 64], sizes = [8, 32], strides = [1, 1]} : vector<8x128xf32> to vector<8x32xf32>
    %149 = vector.extract_strided_slice %145 {offsets = [0, 96], sizes = [8, 32], strides = [1, 1]} : vector<8x128xf32> to vector<8x32xf32>
    %150 = arith.mulf %147, %127 : vector<8x32xf32>
    %151 = arith.mulf %146, %148 : vector<8x32xf32>
    %152 = arith.addf %150, %151 : vector<8x32xf32>
    %153 = math.tanh %152 : vector<8x32xf32>
    %154 = arith.mulf %149, %153 : vector<8x32xf32>
    %c6_i32 = arith.constant 6 : i32
    %c8_i32_43 = arith.constant 8 : i32
    %155 = arith.muli %c6_i32, %c8_i32_43 : i32
    %156 = tpu.assume_multiple %155, 8 : i32
    %157 = arith.index_cast %156 : i32 to index
    %c0_44 = arith.constant 0 : index
    %158 = vector.load %arg8[%157, %c0_44] : memref<64x128xf32, #tpu.memory_space<vmem>>, vector<8x128xf32>
    %159 = arith.truncf %154 : vector<8x32xf32> to vector<8x32xbf16>
    %cst_45 = arith.constant dense<0.000000e+00> : vector<8x128xf32>
    %160 = tpu.matmul %159, %7, %cst_45 {dimension_numbers = #tpu.dot_dimension_numbers<[1], [0], [0], [1], [0, 0, 1, 1], [], []>} : vector<8x32xbf16>, vector<32x128xbf16>, vector<8x128xf32> -> vector<8x128xf32>
    %161 = arith.addf %158, %160 : vector<8x128xf32>
    %cst_46 = arith.constant 5.000000e-01 : f32
    %162 = vector.broadcast %cst_46 : f32 to vector<8x128xf32>
    %163 = arith.mulf %162, %161 : vector<8x128xf32>
    %164 = arith.select %13, %161, %163 : vector<8x128xi1>, vector<8x128xf32>
    %165 = math.tanh %164 : vector<8x128xf32>
    %cst_47 = arith.constant 5.000000e-01 : f32
    %166 = vector.broadcast %cst_47 : f32 to vector<8x128xf32>
    %167 = arith.mulf %166, %165 : vector<8x128xf32>
    %cst_48 = arith.constant 5.000000e-01 : f32
    %168 = vector.broadcast %cst_48 : f32 to vector<8x128xf32>
    %169 = arith.addf %167, %168 : vector<8x128xf32>
    %170 = arith.select %13, %165, %169 : vector<8x128xi1>, vector<8x128xf32>
    %171 = vector.extract_strided_slice %170 {offsets = [0, 0], sizes = [8, 32], strides = [1, 1]} : vector<8x128xf32> to vector<8x32xf32>
    %172 = vector.extract_strided_slice %170 {offsets = [0, 32], sizes = [8, 32], strides = [1, 1]} : vector<8x128xf32> to vector<8x32xf32>
    %173 = vector.extract_strided_slice %170 {offsets = [0, 64], sizes = [8, 32], strides = [1, 1]} : vector<8x128xf32> to vector<8x32xf32>
    %174 = vector.extract_strided_slice %170 {offsets = [0, 96], sizes = [8, 32], strides = [1, 1]} : vector<8x128xf32> to vector<8x32xf32>
    %175 = arith.mulf %172, %152 : vector<8x32xf32>
    %176 = arith.mulf %171, %173 : vector<8x32xf32>
    %177 = arith.addf %175, %176 : vector<8x32xf32>
    %178 = math.tanh %177 : vector<8x32xf32>
    %179 = arith.mulf %174, %178 : vector<8x32xf32>
    %c7_i32 = arith.constant 7 : i32
    %c8_i32_49 = arith.constant 8 : i32
    %180 = arith.muli %c7_i32, %c8_i32_49 : i32
    %181 = tpu.assume_multiple %180, 8 : i32
    %182 = arith.index_cast %181 : i32 to index
    %c0_50 = arith.constant 0 : index
    %183 = vector.load %arg8[%182, %c0_50] : memref<64x128xf32, #tpu.memory_space<vmem>>, vector<8x128xf32>
    %184 = arith.truncf %179 : vector<8x32xf32> to vector<8x32xbf16>
    %cst_51 = arith.constant dense<0.000000e+00> : vector<8x128xf32>
    %185 = tpu.matmul %184, %7, %cst_51 {dimension_numbers = #tpu.dot_dimension_numbers<[1], [0], [0], [1], [0, 0, 1, 1], [], []>} : vector<8x32xbf16>, vector<32x128xbf16>, vector<8x128xf32> -> vector<8x128xf32>
    %186 = arith.addf %183, %185 : vector<8x128xf32>
    %cst_52 = arith.constant 5.000000e-01 : f32
    %187 = vector.broadcast %cst_52 : f32 to vector<8x128xf32>
    %188 = arith.mulf %187, %186 : vector<8x128xf32>
    %189 = arith.select %13, %186, %188 : vector<8x128xi1>, vector<8x128xf32>
    %190 = math.tanh %189 : vector<8x128xf32>
    %cst_53 = arith.constant 5.000000e-01 : f32
    %191 = vector.broadcast %cst_53 : f32 to vector<8x128xf32>
    %192 = arith.mulf %191, %190 : vector<8x128xf32>
    %cst_54 = arith.constant 5.000000e-01 : f32
    %193 = vector.broadcast %cst_54 : f32 to vector<8x128xf32>
    %194 = arith.addf %192, %193 : vector<8x128xf32>
    %195 = arith.select %13, %190, %194 : vector<8x128xi1>, vector<8x128xf32>
    %196 = vector.extract_strided_slice %195 {offsets = [0, 0], sizes = [8, 32], strides = [1, 1]} : vector<8x128xf32> to vector<8x32xf32>
    %197 = vector.extract_strided_slice %195 {offsets = [0, 32], sizes = [8, 32], strides = [1, 1]} : vector<8x128xf32> to vector<8x32xf32>
    %198 = vector.extract_strided_slice %195 {offsets = [0, 64], sizes = [8, 32], strides = [1, 1]} : vector<8x128xf32> to vector<8x32xf32>
    %199 = vector.extract_strided_slice %195 {offsets = [0, 96], sizes = [8, 32], strides = [1, 1]} : vector<8x128xf32> to vector<8x32xf32>
    %200 = arith.mulf %197, %177 : vector<8x32xf32>
    %201 = arith.mulf %196, %198 : vector<8x32xf32>
    %202 = arith.addf %200, %201 : vector<8x32xf32>
    %203 = math.tanh %202 : vector<8x32xf32>
    %204 = arith.mulf %199, %203 : vector<8x32xf32>
    %c7_i32_55 = arith.constant 7 : i32
    %205 = arith.truncf %204 : vector<8x32xf32> to vector<8x32xbf16>
    %c0_56 = arith.constant 0 : index
    %c0_57 = arith.constant 0 : index
    %206 = vector.load %arg5[%c0_56, %c0_57] : memref<32x128xbf16, #tpu.memory_space<vmem>>, vector<32x128xbf16>
    %cst_58 = arith.constant dense<0.000000e+00> : vector<8x128xf32>
    %207 = tpu.matmul %205, %206, %cst_58 {dimension_numbers = #tpu.dot_dimension_numbers<[1], [0], [0], [1], [0, 0, 1, 1], [], []>} : vector<8x32xbf16>, vector<32x128xbf16>, vector<8x128xf32> -> vector<8x128xf32>
    %c0_59 = arith.constant 0 : index
    %c0_60 = arith.constant 0 : index
    %208 = vector.load %arg6[%c0_59, %c0_60] : memref<1x128xf32, #tpu.memory_space<vmem>>, vector<1x128xf32>
    %209 = vector.broadcast %208 : vector<1x128xf32> to vector<8x128xf32>
    %210 = arith.addf %207, %209 : vector<8x128xf32>
    %211 = arith.negf %210 : vector<8x128xf32>
    %212 = math.exp %211 : vector<8x128xf32>
    %cst_61 = arith.constant 1.000000e+00 : f32
    %213 = vector.broadcast %cst_61 : f32 to vector<8x128xf32>
    %214 = arith.addf %213, %212 : vector<8x128xf32>
    %215 = arith.divf %213, %214 : vector<8x128xf32>
    %c0_62 = arith.constant 0 : index
    %c0_63 = arith.constant 0 : index
    %216 = vector.load %arg7[%c0_62, %c0_63] : memref<8x128xf32, #tpu.memory_space<vmem>>, vector<8x128xf32>
    tpu.vector_store %arg7[%c0_62, %c0_63], %215 {strides = array<i32>} : memref<8x128xf32, #tpu.memory_space<vmem>>, vector<8x128xf32>,
    return
  }
  func.func @transform_0(%arg0: i32) -> (i32, i32) {
    %c0_i32 = arith.constant 0 : i32
    %c0_i32_0 = arith.constant 0 : i32
    %c0_i32_1 = arith.constant 0 : i32
    return %c0_i32, %c0_i32_0 : i32, i32
  }
  func.func @transform_1(%arg0: i32) -> (i32, i32) {
    %c0_i32 = arith.constant 0 : i32
    %c0_i32_0 = arith.constant 0 : i32
    %c0_i32_1 = arith.constant 0 : i32
    return %c0_i32, %c0_i32_0 : i32, i32
  }
  func.func @transform_2(%arg0: i32) -> (i32, i32) {
    %c0_i32 = arith.constant 0 : i32
    %c0_i32_0 = arith.constant 0 : i32
    %c0_i32_1 = arith.constant 0 : i32
    return %c0_i32, %c0_i32_0 : i32, i32
  }
  func.func @transform_3(%arg0: i32) -> (i32, i32) {
    %c0_i32 = arith.constant 0 : i32
    %c0_i32_0 = arith.constant 0 : i32
    %c0_i32_1 = arith.constant 0 : i32
    return %c0_i32, %c0_i32_0 : i32, i32
  }
  func.func @transform_4(%arg0: i32) -> (i32, i32) {
    %c0_i32 = arith.constant 0 : i32
    %c0_i32_0 = arith.constant 0 : i32
    %c0_i32_1 = arith.constant 0 : i32
    return %c0_i32, %c0_i32_0 : i32, i32
  }
  func.func @transform_5(%arg0: i32) -> (i32, i32) {
    %c0_i32 = arith.constant 0 : i32
    %c0_i32_0 = arith.constant 0 : i32
    %c0_i32_1 = arith.constant 0 : i32
    return %c0_i32, %c0_i32_0 : i32, i32
  }
  func.func @transform_6(%arg0: i32) -> (i32, i32) {
    %c0_i32 = arith.constant 0 : i32
    %c0_i32_0 = arith.constant 0 : i32
    %c0_i32_1 = arith.constant 0 : i32
    return %c0_i32, %c0_i32_0 : i32, i32
  }
}

</mosaic_0001>

<bundles_post_ra>
// kernel: tpu_custom_call.1
= control target key start
LH: loop header
LB: loop body
LE: loop exit
PB: predicated region body
PF: predicated region fallthrough
CT: control target
= control target key end

     0   :  { %vm76_vm0 = vcmask 261120   ;;  %s1246_s0 = inlined_call_operand.vmem [shape: bf16[64,32], index: 0, kind: input, shape index: {}]   ;;  %s1247_s1 = inlined_call_operand.vmem [shape: bf16[32,128], index: 1, kind: input, shape index: {}]   ;;  %s1248_s2 = inlined_call_operand.vmem [shape: bf16[32,128], index: 2, kind: input, shape index: {}]   ;;  %s1249_s3 = inlined_call_operand.vmem [shape: f32[1,128], index: 3, kind: input, shape index: {}]   ;;  %s1250_s4 = inlined_call_operand.vmem [shape: bf16[32,128], index: 4, kind: input, shape index: {}]   ;;  %s1251_s5 = inlined_call_operand.vmem [shape: f32[1,128], index: 5, kind: input, shape index: {}]   ;;  %s1252_s6 = inlined_call_operand.hbm [shape: f32[8,128], index: 6, kind: output, shape index: {}]  }
   0x1   :  { %v944_v0 = vld [vmem:[%s1247_s1 + $0x8] sm:$0xff]   ;;  %v945_v1 = vld [vmem:[%s1247_s1] sm:$0xff]  }
   0x2   :  { %862 = vmatprep.subr.bf16.mxu0 %v944_v0  ;;  %v946_v2 = vld [vmem:[%s1246_s0] sm:$0xff]   ;;  %v947_v3 = vld [vmem:[%s1246_s0 + $0x8] sm:$0xff]  }
   0x3   :  { %863 = vmatpush3.bf16.msra.mxu0 %v944_v0  ;;  %866 = vmatprep.mubr.msk.bf16.mxu0 %vm76_vm0, %v946_v2 }
   0x4   :  { %864 = vmatprep.subr.bf16.mxu0 %v945_v1 }
   0x7   :  { %865 = vmatpush3.bf16.msra.mxu0 %v945_v1 }
   0x8   :  { %11 = vsyncpa [#allocation4], 0  ;;  %v166_v4 = vlaneseq  ;;  %v1072_v7 = vld [vmem:[%s1249_s3] ss:$0 sm:$0xff]  ;;  %s1012_s3 = smov 64   ;;  %v1087_v19 = vld [vmem:[%s1248_s2 + $0x8] sm:$0xff]  }
   0x9   :  { %v1013_v20 = vmov 0.0   ;;  %vm1014_vm4 = vmmov 0   ;;  %v1096_v21 = vld [vmem:[%s1248_s2] sm:$0xff]   ;;  %s1015_s10 = smov 96   ;;  %s1016_s2 = smov 32  }
   0xa   :  { %867 = vmatmul.mubr.msk.bf16.vlgmr.msra.gmra.mxu0 %vm76_vm0, %v947_v3  ;;  %v167_v5 = vand.u32 127, %v166_v4  ;;  %874 = vmatprep.subr.bf16.mxu1 %v1013_v20  ;;  %v953_v10 = vld [vmem:[%s1250_s4] sm:$0xff]  }
   0xb   :  { %878 = vmatprep.mubr.msk.bf16.mxu1 %vm1014_vm4, %v1013_v20  ;;  %875 = vmatpush3.bf16.msra.mxu1 %v1087_v19 }
   0xc   :  { %vm168_vm1 = vcmp.ge.s32.totalorder %v167_v5, 64  ;;  %vm169_vm2 = vcmp.lt.s32.totalorder %v167_v5, 96  ;;  %890 = vmatprep.subr.bf16.mxu0 %v1013_v20  ;;  %876 = vmatprep.subr.bf16.mxu1 %v1013_v20  ;;  %v950_v5 = vld [vmem:[%s1246_s0 + $0x10] sm:$0xff]  }
   0xd   :  { %vm1075_vm3 = vmand %vm168_vm1, %vm169_vm2  ;;  %891 = vmatpush3.bf16.msra.mxu0 %v1087_v19  ;;  %870 = vmatprep.mubr.msk.bf16.mxu0 %vm76_vm0, %v950_v5 }
   0xe   :  { %892 = vmatprep.subr.bf16.mxu0 %v1013_v20 }
   0xf   :  { %877 = vmatpush3.bf16.msra.mxu1 %v1096_v21 }
  0x10   :  { %882 = vmatprep.subr.bf16.mxu1 %v1013_v20 }
  0x11   :  { %893 = vmatpush3.bf16.msra.mxu0 %v1096_v21 }
  0x12   :  { %906 = vmatprep.subr.bf16.mxu0 %v1013_v20 }
  0xca   :  { %v1067_v6 = vpop.f32.mrf.mxu0 }
  0xcb   :  { %v132_v52 = vadd.f32 %v1067_v6, %v1072_v7  ;;  %v951_v6 = vld [vmem:[%s1246_s0 + $0x18] sm:$0xff]  }
  0xcc   :  { %v123_v8 = vpop.f32.mrf.mxu0  ;;  %871 = vmatmul.mubr.msk.bf16.gmra.mxu0 %vm76_vm0, %v951_v6 }
  0xcd   :  { %v124_v9 = vadd.f32 %v1072_v7, %v123_v8  ;;  %894 = vmatprep.mubr.msk.bf16.mxu0 %vm1014_vm4, %v1013_v20 }
  0xce   :  { %v1115_v27 = vpop.f32.mrf.mxu0 }
  0xcf   :  { %v172_v11 = vmul.f32 0.5, %v124_v9 }
  0xd0   :  { %v126_v28 = vpop.f32.mrf.mxu0 }
  0xd1   :  { %v173_v12 = vsel %vm1075_vm3, %v124_v9, %v172_v11  ;;  %v127_v29 = vadd.f32 %v1072_v7, %v126_v28 }
  0xd2   :  { %954 = vtanh.f32 %v173_v12 }
  0xdf   :  { %v955_v13 = vpop.eup %954 }
  0xe0   :  { %v175_v14 = vmul.f32 0.5, %v955_v13 }
  0xe2   :  { %v176_v15 = vadd.f32 0.5, %v175_v14 }
  0xe4   :  { %v177_v16 = vsel %vm1075_vm3, %v955_v13, %v176_v15 }
  0xe5   :  { %179 = vrot.lane.b32.xlu0 %v177_v16, %s1012_s3 }
 0x157   :  { %v180_v17 = vpop.permute.xlu0 %179 }
 0x158   :  { %v182_v18 = vmul.f32 %v180_v17, %v177_v16 }
 0x15a   :  { %956 = vtanh.f32 %v182_v18 }
 0x167   :  { %v957_v22 = vpop.eup %956 }
 0x168   :  { %185 = vrot.lane.b32.xlu0 %v957_v22, %s1015_s10 }
 0x16c   :  { %258 = vrot.lane.b32.xlu0 %v182_v18, %s1016_s2  ;;  %v135_v18 = vadd.f32 %v1115_v27, %v1072_v7 }
 0x18c   :  { %v1160_v14 = vpop.f32.mrf.mxu0 }
 0x18e   :  { %v139_v15 = vpop.f32.mrf.mxu0 }
 0x1da   :  { %v186_v23 = vpop.permute.xlu0 %185 }
 0x1db   :  { %v188_v24 = vmul.f32 %v186_v23, %v177_v16  ;;  %v1162_v16 = vpop.f32.mrf.mxu0 }
 0x1dd   :  { %v191_v25 = vpack.c.bf16 %v188_v24, %v188_v24  ;;  %v1164_v17 = vpop.f32.mrf.mxu0 }
 0x1de   :  { %v259_v43 = vpop.permute.xlu0 %258 }
 0x1df   :  { %193 = vrot.lane.b32.xlu1 %v191_v25, %s1016_s2 }
 0x251   :  { %v194_v26 = vpop.permute.xlu1 %193 }
 0x252   :  { %879 = vmatmul.mubr.msk.bf16.vlgmr.msra.gmra.mxu1 %vm76_vm0, %v194_v26 }
 0x253   :  { %883 = vmatpush3.bf16.msra.mxu1 %v1087_v19  ;;  %886 = vmatprep.mubr.msk.bf16.mxu1 %vm1014_vm4, %v1013_v20 }
 0x254   :  { %884 = vmatprep.subr.bf16.mxu1 %v1013_v20 }
 0x257   :  { %885 = vmatpush3.bf16.msra.mxu1 %v1096_v21 }
 0x258   :  { %898 = vmatprep.subr.bf16.mxu1 %v1013_v20 }
 0x312   :  { %v244_v30 = vpop.f32.mrf.mxu1 }
 0x313   :  { %v250_v31 = vadd.f32 %v244_v30, %v127_v29 }
 0x314   :  { %v880_v32 = vpop.f32.mrf.mxu1 }
 0x315   :  { %v251_v33 = vmul.f32 0.5, %v250_v31 }
 0x316   :  { %v247_v34 = vpop.f32.mrf.mxu1 }
 0x317   :  { %v252_v35 = vsel %vm1075_vm3, %v250_v31, %v251_v33 }
 0x318   :  { %958 = vtanh.f32 %v252_v35  ;;  %v881_v36 = vpop.f32.mrf.mxu1 }
 0x325   :  { %v959_v37 = vpop.eup %958 }
 0x326   :  { %v254_v38 = vmul.f32 0.5, %v959_v37 }
 0x328   :  { %v255_v39 = vadd.f32 0.5, %v254_v38 }
 0x32a   :  { %v256_v40 = vsel %vm1075_vm3, %v959_v37, %v255_v39 }
 0x32b   :  { %263 = vrot.lane.b32.xlu1 %v256_v40, %s1012_s3  ;;  %v261_v44 = vmul.f32 %v259_v43, %v256_v40  ;;  %v140_v43 = vadd.f32 %v1072_v7, %v139_v15 }
 0x39d   :  { %v264_v41 = vpop.permute.xlu1 %263 }
 0x39e   :  { %v266_v42 = vmul.f32 %v264_v41, %v256_v40 }
 0x3a0   :  { %268 = vrot.lane.b32.xlu1 %v266_v42, %s1016_s2 }
 0x412   :  { %v269_v45 = vpop.permute.xlu1 %268 }
 0x413   :  { %v271_v46 = vadd.f32 %v269_v45, %v261_v44 }
 0x415   :  { %960 = vtanh.f32 %v271_v46 }
 0x422   :  { %v961_v47 = vpop.eup %960 }
 0x423   :  { %274 = vrot.lane.b32.xlu0 %v961_v47, %s1012_s3 }
 0x495   :  { %v275_v48 = vpop.permute.xlu0 %274 }
 0x496   :  { %v277_v49 = vmul.f32 %v275_v48, %v256_v40 }
 0x498   :  { %v280_v50 = vpack.c.bf16 %v277_v49, %v277_v49 }
 0x49a   :  { %282 = vrot.lane.b32.xlu1 %v280_v50, %s1016_s2 }
 0x50c   :  { %v283_v51 = vpop.permute.xlu1 %282 }
 0x50d   :  { %887 = vmatmul.mubr.msk.bf16.vlgmr.msra.gmra.mxu1 %vm76_vm0, %v283_v51 }
 0x50e   :  { %899 = vmatpush3.bf16.msra.mxu1 %v1087_v19  ;;  %902 = vmatprep.mubr.msk.bf16.mxu1 %vm1014_vm4, %v1013_v20 }
 0x50f   :  { %900 = vmatprep.subr.bf16.mxu1 %v1013_v20 }
 0x512   :  { %901 = vmatpush3.bf16.msra.mxu1 %v1096_v21 }
 0x513   :  { %914 = vmatprep.subr.bf16.mxu1 %v1013_v20 }
 0x5cd   :  { %v321_v53 = vpop.f32.mrf.mxu1 }
 0x5ce   :  { %v327_v54 = vadd.f32 %v321_v53, %v132_v52 }
 0x5cf   :  { %v888_v55 = vpop.f32.mrf.mxu1 }
 0x5d0   :  { %v328_v56 = vmul.f32 0.5, %v327_v54 }
 0x5d1   :  { %v324_v57 = vpop.f32.mrf.mxu1 }
 0x5d2   :  { %v329_v58 = vsel %vm1075_vm3, %v327_v54, %v328_v56 }
 0x5d3   :  { %962 = vtanh.f32 %v329_v58  ;;  %v889_v59 = vpop.f32.mrf.mxu1 }
 0x5e0   :  { %v963_v60 = vpop.eup %962 }
 0x5e1   :  { %v331_v61 = vmul.f32 0.5, %v963_v60 }
 0x5e3   :  { %v332_v62 = vadd.f32 0.5, %v331_v61 }
 0x5e5   :  { %v333_v63 = vsel %vm1075_vm3, %v963_v60, %v332_v62 }
 0x5e6   :  { %336 = vrot.lane.b32.xlu0 %v333_v63, %s1012_s3  ;;  %v334_v2 = vmul.f32 %v333_v63, %v271_v46 }
 0x658   :  { %v337_v0 = vpop.permute.xlu0 %336 }
 0x659   :  { %v339_v1 = vmul.f32 %v337_v0, %v333_v63 }
 0x65b   :  { %341 = vrot.lane.b32.xlu1 %v339_v1, %s1016_s2  ;;  %v143_v1 = vadd.f32 %v1072_v7, %v1164_v17 }
 0x6cd   :  { %v342_v3 = vpop.permute.xlu1 %341 }
 0x6ce   :  { %v344_v4 = vadd.f32 %v342_v3, %v334_v2 }
 0x6d0   :  { %964 = vtanh.f32 %v344_v4 }
 0x6dd   :  { %v965_v8 = vpop.eup %964 }
 0x6de   :  { %347 = vrot.lane.b32.xlu0 %v965_v8, %s1012_s3 }
 0x750   :  { %v348_v9 = vpop.permute.xlu0 %347 }
 0x751   :  { %v350_v11 = vmul.f32 %v348_v9, %v333_v63 }
 0x753   :  { %v353_v12 = vpack.c.bf16 %v350_v11, %v350_v11 }
 0x755   :  { %355 = vrot.lane.b32.xlu1 %v353_v12, %s1016_s2 }
 0x7c7   :  { %v356_v13 = vpop.permute.xlu1 %355 }
 0x7c8   :  { %895 = vmatmul.mubr.msk.bf16.vlgmr.msra.gmra.mxu0 %vm76_vm0, %v356_v13 }
 0x7c9   :  { %907 = vmatpush3.bf16.msra.mxu0 %v1087_v19  ;;  %910 = vmatprep.mubr.msk.bf16.mxu0 %vm1014_vm4, %v1013_v20 }
 0x7ca   :  { %908 = vmatprep.subr.bf16.mxu0 %v1013_v20 }
 0x7cd   :  { %909 = vmatpush3.bf16.msra.mxu0 %v1096_v21 }
 0x7ce   :  { %922 = vmatprep.subr.bf16.mxu0 %v1013_v20 }
 0x888   :  { %v394_v22 = vpop.f32.mrf.mxu0 }
 0x889   :  { %v400_v23 = vadd.f32 %v394_v22, %v135_v18 }
 0x88a   :  { %v896_v24 = vpop.f32.mrf.mxu0 }
 0x88b   :  { %v401_v25 = vmul.f32 0.5, %v400_v23 }
 0x88c   :  { %v397_v26 = vpop.f32.mrf.mxu0 }
 0x88d   :  { %v402_v28 = vsel %vm1075_vm3, %v400_v23, %v401_v25 }
 0x88e   :  { %966 = vtanh.f32 %v402_v28  ;;  %v897_v29 = vpop.f32.mrf.mxu0 }
 0x88f   :  { %v148_v29 = vadd.f32 %v1160_v14, %v1072_v7 }
 0x89b   :  { %v967_v30 = vpop.eup %966 }
 0x89c   :  { %v404_v31 = vmul.f32 0.5, %v967_v30 }
 0x89e   :  { %v405_v32 = vadd.f32 0.5, %v404_v31 }
 0x8a0   :  { %v406_v33 = vsel %vm1075_vm3, %v967_v30, %v405_v32 }
 0x8a1   :  { %409 = vrot.lane.b32.xlu0 %v406_v33, %s1012_s3  ;;  %v407_v35 = vmul.f32 %v406_v33, %v344_v4 }
 0x913   :  { %v410_v34 = vpop.permute.xlu0 %409 }
 0x914   :  { %v412_v27 = vmul.f32 %v410_v34, %v406_v33 }
 0x916   :  { %414 = vrot.lane.b32.xlu1 %v412_v27, %s1016_s2 }
 0x988   :  { %v415_v36 = vpop.permute.xlu1 %414 }
 0x989   :  { %v417_v37 = vadd.f32 %v415_v36, %v407_v35 }
 0x98b   :  { %968 = vtanh.f32 %v417_v37 }
 0x998   :  { %v969_v38 = vpop.eup %968 }
 0x999   :  { %420 = vrot.lane.b32.xlu0 %v969_v38, %s1012_s3 }
 0xa0b   :  { %v421_v39 = vpop.permute.xlu0 %420 }
 0xa0c   :  { %v423_v40 = vmul.f32 %v421_v39, %v406_v33 }
 0xa0e   :  { %v426_v41 = vpack.c.bf16 %v423_v40, %v423_v40 }
 0xa10   :  { %428 = vrot.lane.b32.xlu1 %v426_v41, %s1016_s2 }
 0xa82   :  { %v429_v42 = vpop.permute.xlu1 %428 }
 0xa83   :  { %903 = vmatmul.mubr.msk.bf16.vlgmr.msra.gmra.mxu1 %vm76_vm0, %v429_v42 }
 0xa84   :  { %915 = vmatpush3.bf16.msra.mxu1 %v1087_v19  ;;  %918 = vmatprep.mubr.msk.bf16.mxu1 %vm1014_vm4, %v1013_v20 }
 0xa85   :  { %916 = vmatprep.subr.bf16.mxu1 %v1013_v20 }
 0xa88   :  { %917 = vmatpush3.bf16.msra.mxu1 %v1096_v21 }
 0xa89   :  { %930 = vmatprep.subr.bf16.mxu1 %v1013_v20 }
 0xb43   :  { %v467_v44 = vpop.f32.mrf.mxu1 }
 0xb44   :  { %v473_v45 = vadd.f32 %v467_v44, %v140_v43 }
 0xb45   :  { %v904_v46 = vpop.f32.mrf.mxu1 }
 0xb46   :  { %v474_v47 = vmul.f32 0.5, %v473_v45 }
 0xb47   :  { %v470_v48 = vpop.f32.mrf.mxu1 }
 0xb48   :  { %v475_v49 = vsel %vm1075_vm3, %v473_v45, %v474_v47 }
 0xb49   :  { %970 = vtanh.f32 %v475_v49  ;;  %v905_v50 = vpop.f32.mrf.mxu1  ;;  %v151_v49 = vadd.f32 %v1162_v16, %v1072_v7 }
 0xb56   :  { %v971_v51 = vpop.eup %970 }
 0xb57   :  { %v477_v52 = vmul.f32 0.5, %v971_v51 }
 0xb59   :  { %v478_v53 = vadd.f32 0.5, %v477_v52 }
 0xb5b   :  { %v479_v54 = vsel %vm1075_vm3, %v971_v51, %v478_v53 }
 0xb5c   :  { %482 = vrot.lane.b32.xlu0 %v479_v54, %s1012_s3  ;;  %v480_v57 = vmul.f32 %v479_v54, %v417_v37 }
 0xbce   :  { %v483_v55 = vpop.permute.xlu0 %482 }
 0xbcf   :  { %v485_v56 = vmul.f32 %v483_v55, %v479_v54 }
 0xbd1   :  { %487 = vrot.lane.b32.xlu1 %v485_v56, %s1016_s2 }
 0xc43   :  { %v488_v58 = vpop.permute.xlu1 %487 }
 0xc44   :  { %v490_v59 = vadd.f32 %v488_v58, %v480_v57 }
 0xc46   :  { %972 = vtanh.f32 %v490_v59 }
 0xc53   :  { %v973_v60 = vpop.eup %972 }
 0xc54   :  { %493 = vrot.lane.b32.xlu0 %v973_v60, %s1012_s3 }
 0xcc6   :  { %v494_v61 = vpop.permute.xlu0 %493 }
 0xcc7   :  { %v496_v62 = vmul.f32 %v494_v61, %v479_v54 }
 0xcc9   :  { %v499_v63 = vpack.c.bf16 %v496_v62, %v496_v62 }
 0xccb   :  { %501 = vrot.lane.b32.xlu1 %v499_v63, %s1016_s2 }
 0xd3d   :  { %v502_v0 = vpop.permute.xlu1 %501 }
 0xd3e   :  { %911 = vmatmul.mubr.msk.bf16.vlgmr.msra.gmra.mxu0 %vm76_vm0, %v502_v0  ;;  %v952_v0 = vld [vmem:[%s1250_s4 + $0x8] sm:$0xff]   ;;  %s1017_s4 = smov [#allocation3]  }
 0xd3f   :  { %923 = vmatpush3.bf16.msra.mxu0 %v1087_v19  ;;  %926 = vmatprep.mubr.msk.bf16.mxu0 %vm1014_vm4, %v1013_v20  ;;  %s799_s20 = sshll.u32 %s1017_s4, 4  ;;  %s800_s20 = int_to_ptr.vmem [resolvable:$true] %s799_s20 }
 0xd40   :  { %924 = vmatprep.subr.bf16.mxu0 %v1013_v20  ;;  %s990_s21 = scalar_lea.vmem %s800_s20, 128  ;;  %p995_p1 = scmp.lt.s32.totalorder %s800_s20, %s800_s20 }
 0xd41   :  { %p991_p0 = scmp.ne.s32.totalorder %s800_s20, %s990_s21  ;;  %p996_p2 = scmp.lt.s32.totalorder %s990_s21, %s990_s21 }
 0xd43   :  { %925 = vmatpush3.bf16.msra.mxu0 %v1096_v21  ;;  %p997_p3 = por %p996_p2, %p995_p1 }
 0xd45   :  { %p998_p4 = pnand %p997_p3, %p991_p0 }
 0xdfe   :  { %v540_v2 = vpop.f32.mrf.mxu0 }
 0xdff   :  { %v546_v3 = vadd.f32 %v540_v2, %v143_v1 }
 0xe00   :  { %v912_v4 = vpop.f32.mrf.mxu0 }
 0xe01   :  { %v547_v5 = vmul.f32 0.5, %v546_v3 }
 0xe02   :  { %v543_v6 = vpop.f32.mrf.mxu0 }
 0xe03   :  { %v548_v8 = vsel %vm1075_vm3, %v546_v3, %v547_v5  ;;  %v827_v6 = vld [vmem:[%s1251_s5] ss:$0 sm:$0xff] }
 0xe04   :  { %974 = vtanh.f32 %v548_v8  ;;  %v913_v19 = vpop.f32.mrf.mxu0 }
 0xe11   :  { %v975_v9 = vpop.eup %974 }
 0xe12   :  { %v550_v11 = vmul.f32 0.5, %v975_v9 }
 0xe14   :  { %v551_v12 = vadd.f32 0.5, %v550_v11 }
 0xe16   :  { %v552_v13 = vsel %vm1075_vm3, %v975_v9, %v551_v12 }
 0xe17   :  { %555 = vrot.lane.b32.xlu0 %v552_v13, %s1012_s3  ;;  %v553_v17 = vmul.f32 %v552_v13, %v490_v59 }
 0xe89   :  { %v556_v21 = vpop.permute.xlu0 %555 }
 0xe8a   :  { %v558_v15 = vmul.f32 %v556_v21, %v552_v13 }
 0xe8c   :  { %560 = vrot.lane.b32.xlu1 %v558_v15, %s1016_s2 }
 0xefe   :  { %v561_v18 = vpop.permute.xlu1 %560 }
 0xeff   :  { %v563_v22 = vadd.f32 %v561_v18, %v553_v17 }
 0xf01   :  { %976 = vtanh.f32 %v563_v22 }
 0xf0e   :  { %v977_v23 = vpop.eup %976 }
 0xf0f   :  { %566 = vrot.lane.b32.xlu0 %v977_v23, %s1012_s3 }
 0xf81   :  { %v567_v24 = vpop.permute.xlu0 %566 }
 0xf82   :  { %v569_v25 = vmul.f32 %v567_v24, %v552_v13 }
 0xf84   :  { %v572_v26 = vpack.c.bf16 %v569_v25, %v569_v25 }
 0xf86   :  { %574 = vrot.lane.b32.xlu1 %v572_v26, %s1016_s2 }
 0xff8   :  { %v575_v28 = vpop.permute.xlu1 %574 }
 0xff9   :  { %919 = vmatmul.mubr.msk.bf16.vlgmr.msra.gmra.mxu1 %vm76_vm0, %v575_v28 }
 0xffa   :  { %934 = vmatprep.mubr.msk.bf16.mxu1 %vm1014_vm4, %v1013_v20  ;;  %931 = vmatpush3.bf16.msra.mxu1 %v952_v0 }
 0xffb   :  { %932 = vmatprep.subr.bf16.mxu1 %v1013_v20 }
 0xffe   :  { %933 = vmatpush3.bf16.msra.mxu1 %v953_v10 }
0x10b9   :  { %v613_v30 = vpop.f32.mrf.mxu1 }
0x10ba   :  { %v619_v31 = vadd.f32 %v613_v30, %v148_v29 }
0x10bb   :  { %v920_v32 = vpop.f32.mrf.mxu1 }
0x10bc   :  { %v620_v33 = vmul.f32 0.5, %v619_v31 }
0x10bd   :  { %v616_v34 = vpop.f32.mrf.mxu1 }
0x10be   :  { %v621_v27 = vsel %vm1075_vm3, %v619_v31, %v620_v33 }
0x10bf   :  { %978 = vtanh.f32 %v621_v27  ;;  %v921_v35 = vpop.f32.mrf.mxu1 }
0x10cc   :  { %v979_v36 = vpop.eup %978 }
0x10cd   :  { %v623_v37 = vmul.f32 0.5, %v979_v36 }
0x10cf   :  { %v624_v38 = vadd.f32 0.5, %v623_v37 }
0x10d1   :  { %v625_v39 = vsel %vm1075_vm3, %v979_v36, %v624_v38 }
0x10d2   :  { %628 = vrot.lane.b32.xlu0 %v625_v39, %s1012_s3  ;;  %v626_v41 = vmul.f32 %v625_v39, %v563_v22 }
0x1144   :  { %v629_v40 = vpop.permute.xlu0 %628 }
0x1145   :  { %v631_v14 = vmul.f32 %v629_v40, %v625_v39 }
0x1147   :  { %633 = vrot.lane.b32.xlu1 %v631_v14, %s1016_s2 }
0x11b9   :  { %v634_v42 = vpop.permute.xlu1 %633 }
0x11ba   :  { %v636_v43 = vadd.f32 %v634_v42, %v626_v41 }
0x11bc   :  { %980 = vtanh.f32 %v636_v43 }
0x11c9   :  { %v981_v44 = vpop.eup %980 }
0x11ca   :  { %639 = vrot.lane.b32.xlu0 %v981_v44, %s1012_s3 }
0x123c   :  { %v640_v45 = vpop.permute.xlu0 %639 }
0x123d   :  { %v642_v46 = vmul.f32 %v640_v45, %v625_v39 }
0x123f   :  { %v645_v47 = vpack.c.bf16 %v642_v46, %v642_v46 }
0x1241   :  { %647 = vrot.lane.b32.xlu1 %v645_v47, %s1016_s2 }
0x12b3   :  { %v648_v48 = vpop.permute.xlu1 %647 }
0x12b4   :  { %927 = vmatmul.mubr.msk.bf16.vlgmr.msra.gmra.mxu0 %vm76_vm0, %v648_v48 }
0x1374   :  { %v686_v50 = vpop.f32.mrf.mxu0 }
0x1375   :  { %v692_v51 = vadd.f32 %v686_v50, %v151_v49 }
0x1376   :  { %v928_v52 = vpop.f32.mrf.mxu0 }
0x1377   :  { %v693_v53 = vmul.f32 0.5, %v692_v51 }
0x1378   :  { %v689_v54 = vpop.f32.mrf.mxu0 }
0x1379   :  { %v694_v55 = vsel %vm1075_vm3, %v692_v51, %v693_v53 }
0x137a   :  { %982 = vtanh.f32 %v694_v55  ;;  %v929_v56 = vpop.f32.mrf.mxu0 }
0x1387   :  { %v983_v57 = vpop.eup %982 }
0x1388   :  { %v696_v58 = vmul.f32 0.5, %v983_v57 }
0x138a   :  { %v697_v59 = vadd.f32 0.5, %v696_v58 }
0x138c   :  { %v698_v60 = vsel %vm1075_vm3, %v983_v57, %v697_v59 }
0x138d   :  { %701 = vrot.lane.b32.xlu0 %v698_v60, %s1012_s3  ;;  %v699_v16 = vmul.f32 %v698_v60, %v636_v43 }
0x13ff   :  { %v702_v61 = vpop.permute.xlu0 %701 }
0x1400   :  { %v704_v7 = vmul.f32 %v702_v61, %v698_v60 }
0x1402   :  { %706 = vrot.lane.b32.xlu1 %v704_v7, %s1016_s2 }
0x1474   :  { %v707_v62 = vpop.permute.xlu1 %706 }
0x1475   :  { %v709_v63 = vadd.f32 %v707_v62, %v699_v16 }
0x1477   :  { %984 = vtanh.f32 %v709_v63 }
0x1484   :  { %v985_v1 = vpop.eup %984 }
0x1485   :  { %712 = vrot.lane.b32.xlu0 %v985_v1, %s1012_s3 }
0x14f7   :  { %v713_v2 = vpop.permute.xlu0 %712 }
0x14f8   :  { %v715_v3 = vmul.f32 %v713_v2, %v698_v60 }
0x14fa   :  { %v716_v4 = vpack.c.bf16 %v715_v3, %v715_v3 }
0x14fc   :  { %729 = vrot.lane.b32.xlu1 %v716_v4, %s1016_s2 }
0x156e   :  { %v730_v5 = vpop.permute.xlu1 %729 }
0x156f   :  { %935 = vmatmul.mubr.msk.bf16.vlgmr.msra.gmra.mxu1 %vm76_vm0, %v730_v5 }
0x162f   :  { %v780_v8 = vpop.f32.mrf.mxu1 }
0x1630   :  { %v781_v19 = vadd.f32 %v827_v6, %v780_v8 }
0x1631   :  { %v936_v9 = vpop.f32.mrf.mxu1 }
0x1632   :  { %v831_v20 = vmul.f32 -1.442695, %v781_v19 }
0x1633   :  { %v783_v11 = vpop.f32.mrf.mxu1 }
0x1634   :  { %986 = vpow2.f32 %v831_v20 }
0x1635   :  { %v937_v12 = vpop.f32.mrf.mxu1 }
0x1641   :  { %v987_v13 = vpop.eup %986 }
0x1642   :  { %v789_v21 = vadd.f32 1.0, %v987_v13 }
0x1644   :  { %988 = vrcp.f32 %v789_v21 }
0x1651   :  { %v989_v15 = vpop.eup %988 }
0x1652   :  { %792 = vst [vmem:[#allocation3] sm:$0xff] %v989_v15 }
0x1653   :  { %1001 = shalt.err (!%p998_p4)
}
0x1654   :  { %802 = dma.vmem_to_hbm [thread:$0]  %s800_s20, 128, %s1252_s6, [#allocation4]  }
0x1655   :  { %1010 = dma.done.wait [#allocation4], 128  }
0x1656   :  { %1011 = vsyncadd [#allocation4], 4294967168 }
0x1657   :  { %806 = vsyncpa [#allocation4], 1 }

</bundles_post_ra>
